<compile_context>
chip_gen: v7x
topology: tpu7x:2x2x1
jax: 0.10.0
libtpu: 0.0.40
codegen_flags: <defaults>
</compile_context>

<pallas_src>
import jax
import jax.numpy as jnp
from jax.experimental import pallas as pl
from jax.experimental.pallas import tpu as pltpu


_TILE_BYTE_BUDGET = 4 << 20    # ~4 MiB per tile (per array)
_VMEM_LIMIT_BYTES = 40 << 20   # in+out double-buffered tiles + headroom; < 64 MiB (v7x phys)


def _chomp_kernel(x_ref, o_ref):
    # Fast path: identical block shapes -> the slice is a trace-time no-op and
    # this is a straight unmasked block copy.
    # Small-shape fallback: slices the chomped tail off the lane axis in-kernel.
    o_ref[...] = x_ref[:, : o_ref.shape[-1]]


def chomp1d(x: jnp.ndarray, chomp_size: int) -> jnp.ndarray:
    """Pallas implementation of Chomp1d.forward: x[:, :, :-chomp_size]."""
    assert chomp_size > 0, "chomp_size must be positive (matches PyTorch slice)"
    n, c, l = x.shape
    l_out = l - chomp_size
    assert l_out > 0, "chomp_size must be smaller than the temporal length"

    # Flatten batch x channels into rows (metadata-only reshape): clean
    # row-major 2-D layout and plenty of grid points to shard across cores.
    r = n * c
    x2 = x.reshape(r, l)

    itemsize = jnp.dtype(x.dtype).itemsize
    budget_elems = max(_TILE_BYTE_BUDGET // itemsize, 8 * 128)
    sub = max(8, 32 // itemsize)  # sublane pack: f32 -> 8, bf16 -> 16, int8 -> 32

    cost = pl.CostEstimate(
        flops=0,
        transcendentals=0,
        bytes_accessed=(r * l + r * l_out) * itemsize,
    )

    if l_out >= 128:
        # ---- Fast path: tile over the *output* temporal extent -------------
        # Lane tile: as large as the byte budget allows (assuming the minimal
        # sublane-pack row count), 128-multiple, never exceeding l_out, and
        # balanced across columns so no column block is nearly empty.
        tl_cap = max(128, (budget_elems // sub) // 128 * 128)
        tl0 = min(tl_cap, (l_out // 128) * 128)        # largest safe 128-multiple
        ncols = pl.cdiv(l_out, tl0)
        tl = 128 * pl.cdiv(l_out, 128 * ncols)         # balanced, tl <= tl0 <= l_out

        # Row tile: fill the remaining byte budget, sublane-pack multiple,
        # balanced across row blocks.
        if r < sub:
            tr = r                                     # full-dim escape hatch
        else:
            tr_cap = max(sub, (budget_elems // tl) // sub * sub)
            tr0 = min(tr_cap, (r // sub) * sub)
            nrows = pl.cdiv(r, tr0)
            if nrows == 1 and r >= 2 * sub:
                # Megacore (v7x): guarantee >=2 row blocks so the two
                # TensorCores each stream a disjoint contiguous HBM stripe.
                nrows = 2
            tr = sub * pl.cdiv(r, sub * nrows)         # tr <= r by construction

        grid = (pl.cdiv(r, tr), pl.cdiv(l_out, tl))
        in_specs = [pl.BlockSpec((tr, tl), lambda i, j: (i, j))]
        out_specs = pl.BlockSpec((tr, tl), lambda i, j: (i, j))
        dim_sems = ("parallel", "parallel")
    else:
        # ---- Small-L fallback: full temporal extent per block ---------------
        # (full last dims satisfy the (8,128) rule for arbitrary tiny shapes;
        # the kernel slices off the chomped tail in VMEM.)
        tr = r if r <= 256 else 256
        grid = (pl.cdiv(r, tr),)
        in_specs = [pl.BlockSpec((tr, l), lambda i: (i, 0))]
        out_specs = pl.BlockSpec((tr, l_out), lambda i: (i, 0))
        dim_sems = ("parallel",)

    out2 = pl.pallas_call(
        _chomp_kernel,
        out_shape=jax.ShapeDtypeStruct((r, l_out), x.dtype),
        grid=grid,
        in_specs=in_specs,
        out_specs=out_specs,
        compiler_params=pltpu.CompilerParams(
            dimension_semantics=dim_sems,
            vmem_limit_bytes=_VMEM_LIMIT_BYTES,
        ),
        cost_estimate=cost,
    )(x2)

    return out2.reshape(n, c, l_out)


if __name__ == "__main__":
    key = jax.random.PRNGKey(0)

    # 1) Small shape consistent with the module (exercises the fallback path).
    N, C, L = 2, 4, 16
    chomp_size = 3  # (kernel_size - 1) * dilation padding to remove
    x = jax.random.normal(key, (N, C, L), dtype=jnp.float32)
    out = jax.block_until_ready(chomp1d(x, chomp_size))
    ref = x[:, :, :-chomp_size]
    assert out.shape == (N, C, L - chomp_size), out.shape
    assert out.dtype == x.dtype
    assert jnp.array_equal(out, ref), "mismatch vs. reference slice (fallback path)"

    # 2) Longer sequence: tiled fast path, exact 128-multiple output extent.
    N2, C2, L2, chomp2 = 2, 8, 259, 3  # L_out = 256
    x2 = jax.random.normal(jax.random.PRNGKey(1), (N2, C2, L2), dtype=jnp.float32)
    out2 = jax.block_until_ready(chomp1d(x2, chomp2))
    ref2 = x2[:, :, :-chomp2]
    assert out2.shape == (N2, C2, L2 - chomp2), out2.shape
    assert jnp.array_equal(out2, ref2), "mismatch vs. reference slice (fast path)"

    # 3) bf16, output extent not a 128-multiple: exercises the clipped edge
    #    column + balanced lane tiling + dtype-aware sublane pack.
    N3, C3, L3, chomp3 = 2, 8, 200, 5  # L_out = 195
    x3 = jax.random.normal(jax.random.PRNGKey(2), (N3, C3, L3), dtype=jnp.bfloat16)
    out3 = jax.block_until_ready(chomp1d(x3, chomp3))
    ref3 = x3[:, :, :-chomp3]
    assert out3.shape == (N3, C3, L3 - chomp3), out3.shape
    assert out3.dtype == x3.dtype
    assert jnp.array_equal(out3, ref3), "mismatch vs. reference slice (bf16 edge path)"

    print("KERNEL_OK")
</pallas_src>

<mosaic_0001>
module attributes {stable_mosaic.version = 11 : i64} {
  func.func @_chomp_kernel(%arg0: i32, %arg1: memref<8x16xf32, #tpu.memory_space<vmem>>, %arg2: memref<8x13xf32, #tpu.memory_space<vmem>>) attributes {dimension_semantics = [#tpu.dimension_semantics<parallel>], iteration_bounds = array<i64: 1>, scalar_prefetch = 0 : i64, scratch_operands = 0 : i64, tpu.core_type = #tpu.core_type<tc>, window_params = [{transform_indices = @transform_0, window_bounds = array<i64: 8, 16>}, {transform_indices = @transform_1, window_bounds = array<i64: 8, 13>}]} {
    %c0 = arith.constant 0 : index
    %c0_0 = arith.constant 0 : index
    %0 = vector.load %arg1[%c0, %c0_0] : memref<8x16xf32, #tpu.memory_space<vmem>>, vector<8x13xf32>
    %c0_1 = arith.constant 0 : index
    %c0_2 = arith.constant 0 : index
    %1 = vector.load %arg2[%c0_1, %c0_2] : memref<8x13xf32, #tpu.memory_space<vmem>>, vector<8x13xf32>
    tpu.vector_store %arg2[%c0_1, %c0_2], %0 {strides = array<i32>} : memref<8x13xf32, #tpu.memory_space<vmem>>, vector<8x13xf32>,
    return
  }
  func.func @transform_0(%arg0: i32) -> (i32, i32) {
    %c0_i32 = arith.constant 0 : i32
    %c0_i32_0 = arith.constant 0 : i32
    return %arg0, %c0_i32 : i32, i32
  }
  func.func @transform_1(%arg0: i32) -> (i32, i32) {
    %c0_i32 = arith.constant 0 : i32
    %c0_i32_0 = arith.constant 0 : i32
    return %arg0, %c0_i32 : i32, i32
  }
}

</mosaic_0001>

<bundles_post_ra>
// kernel: tpu_custom_call.1
= control target key start
LH: loop header
LB: loop body
LE: loop exit
PB: predicated region body
PF: predicated region fallthrough
CT: control target
= control target key end

     0   :  { %6 = vsyncpa [#allocation3], 0  ;;  %s125_s0 = inlined_call_operand.hbm [shape: f32[8,16], index: 0, kind: input, shape index: {}]   ;;  %s126_s1 = inlined_call_operand.hbm [shape: f32[8,13], index: 1, kind: output, shape index: {}]  }
   0x1   :  { %7 = vsyncpa [#allocation4], 0  ;;  %s89_s6 = smov [#allocation2]   ;;  %s41_s10 = scalar_lea.hbm %s125_s0, 128 }
   0x2   :  { %s14_s7 = sshll.u32 %s89_s6, 4  ;;  %p42_p0 = scmp.ne.s32.totalorder %s125_s0, %s41_s10  ;;  %s15_s7 = int_to_ptr.vmem [resolvable:$true] %s14_s7 }
   0x3   :  { %p45_p1 = scmp.lt.u32.totalorder %s41_s10, %s125_s0 }
   0x5   :  { %p47_p2 = pnand %p45_p1, %p42_p0 }
   0x7   :  { %50 = shalt.err (!%p47_p2)
}
   0x8   :  { %s51_s15 = scalar_lea.vmem %s15_s7, 128  ;;  %p56_p4 = scmp.lt.s32.totalorder %s15_s7, %s15_s7 }
   0x9   :  { %p52_p3 = scmp.ne.s32.totalorder %s15_s7, %s51_s15  ;;  %p57_p5 = scmp.lt.s32.totalorder %s51_s15, %s51_s15 }
   0xb   :  { %p58_p6 = por %p57_p5, %p56_p4 }
   0xd   :  { %p59_p7 = pnand %p58_p6, %p52_p3 }
   0xf   :  { %62 = shalt.err (!%p59_p7)
}
  0x10   :  { %17 = dma.hbm_to_vmem [thread:$0]  %s125_s0, 128, %s15_s7, [#allocation3]  }
  0x11   :  { %85 = dma.done.wait [#allocation3], 128  }
  0x12   :  { %86 = vsyncadd [#allocation3], 4294967168  ;;  %s90_s18 = smov [#allocation5]   ;;  %vm22_vm0 = vcmask 105472   ;;  %v21_v0 = vld [vmem:[#allocation2] sm:$0xff] }
  0x13   :  { %s30_s19 = sshll.u32 %s90_s18, 4  ;;  %23 = vst.msk [vmem:[#allocation5] sm:$0xff] %vm22_vm0, %v21_v0  ;;  %s31_s19 = int_to_ptr.vmem [resolvable:$true] %s30_s19 }
  0x14   :  { %s63_s20 = scalar_lea.vmem %s31_s19, 128  ;;  %p68_p9 = scmp.lt.s32.totalorder %s31_s19, %s31_s19 }
  0x15   :  { %p64_p8 = scmp.ne.s32.totalorder %s31_s19, %s63_s20  ;;  %p69_p10 = scmp.lt.s32.totalorder %s63_s20, %s63_s20 }
  0x17   :  { %p70_p11 = por %p69_p10, %p68_p9 }
  0x19   :  { %p71_p12 = pnand %p70_p11, %p64_p8 }
  0x1b   :  { %74 = shalt.err (!%p71_p12)
}
  0x1c   :  { %s75_s23 = scalar_lea.hbm %s126_s1, 128 }
  0x1d   :  { %p76_p13 = scmp.ne.s32.totalorder %s126_s1, %s75_s23  ;;  %p79_p0 = scmp.lt.u32.totalorder %s75_s23, %s126_s1 }
  0x1f   :  { %p81_p1 = pnand %p79_p0, %p76_p13 }
  0x21   :  { %84 = shalt.err (!%p81_p1)
}
  0x22   :  { %33 = dma.vmem_to_hbm [thread:$0]  %s31_s19, 128, %s126_s1, [#allocation4]  }
  0x23   :  { %87 = dma.done.wait [#allocation4], 128  }
  0x24   :  { %88 = vsyncadd [#allocation4], 4294967168 }
  0x25   :  { %37 = vsyncpa [#allocation3], 1 }
  0x26   :  { %38 = vsyncpa [#allocation4], 1 }

</bundles_post_ra>
